<compile_context>
chip_gen: v7x
topology: tpu7x:2x2x1
jax: 0.10.0
libtpu: 0.0.40
codegen_flags: <defaults>
</compile_context>

<pallas_src>
import functools

import jax
import jax.numpy as jnp
from jax.experimental import pallas as pl
from jax.experimental.pallas import tpu as pltpu


def _round_up(x, m):
    return ((x + m - 1) // m) * m


# ---------------------------------------------------------------------------
# Kernels
# ---------------------------------------------------------------------------
def _ffn_kernel_resident(x_ref, w1_ref, b1_ref, w2_ref, b2_ref, o_ref):
    # Weights fully resident in VMEM; single grid axis over row tiles.
    h = jnp.dot(x_ref[...], w1_ref[...], preferred_element_type=jnp.float32)
    h = jnp.maximum(h + b1_ref[...], 0.0)              # bias + ReLU in f32
    # (dropout == identity in eval mode)
    y = jnp.dot(h.astype(w2_ref.dtype), w2_ref[...],
                preferred_element_type=jnp.float32)
    o_ref[...] = (y + b2_ref[...]).astype(o_ref.dtype)


def _ffn_kernel_tiled(x_ref, w1_ref, b1_ref, w2_ref, b2_ref, o_ref, acc_ref):
    # d_ff tiled along grid axis 1 ("arbitrary"); f32 accumulator scratch.
    k = pl.program_id(1)

    @pl.when(k == 0)
    def _():
        # Seed the accumulator with b2 so finalize is a pure cast.
        acc_ref[...] = jnp.broadcast_to(b2_ref[...], acc_ref.shape)

    h = jnp.dot(x_ref[...], w1_ref[...], preferred_element_type=jnp.float32)
    h = jnp.maximum(h + b1_ref[...], 0.0)
    # (dropout == identity in eval mode)
    acc_ref[...] += jnp.dot(h.astype(w2_ref.dtype), w2_ref[...],
                            preferred_element_type=jnp.float32)

    @pl.when(k == pl.num_programs(1) - 1)
    def _():
        o_ref[...] = acc_ref[...].astype(o_ref.dtype)


# ---------------------------------------------------------------------------
# VMEM budgets / tile selection
# ---------------------------------------------------------------------------
_VMEM_INFO_CACHE = None


def _vmem_budget_and_cap():
    """(tile-planning budget, vmem_limit cap), generation-aware."""
    global _VMEM_INFO_CACHE
    if _VMEM_INFO_CACHE is None:
        cap_phys = 64 << 20                       # conservative (v7x per-TC)
        try:
            cap_phys = int(getattr(pltpu.get_tpu_info(),
                                   "vmem_capacity_bytes", cap_phys))
        except Exception:
            pass
        if cap_phys >= (96 << 20):                # v5e / v6e: 128 MiB physical
            _VMEM_INFO_CACHE = (96 << 20, 108 << 20)
        else:                                     # v7x: 64 MiB per TensorCore
            _VMEM_INFO_CACHE = (40 << 20, 48 << 20)
    return _VMEM_INFO_CACHE


def _pick_row_tile(M, tm):
    M8 = _round_up(max(M, 1), 8)
    if tm is not None:
        return max(8, min(_round_up(tm, 8), M8))
    if M8 <= 256:
        return M8                                  # one tile covers everything
    if M8 <= 1024:
        return _round_up((M8 + 1) // 2, 8)         # >=2 tiles -> both v7x TCs busy
    return 512                                     # 256-aligned, clears bf16 ridge


def _est_resident(tm, dm_pad, dff_pad, in_b, out_b):
    return (2 * tm * dm_pad * in_b                 # x tile (double-buffered)
            + 2 * tm * dm_pad * out_b              # out tile (double-buffered)
            + 4 * dm_pad * dff_pad * in_b          # W1 + W2 (2 bufs, conservative)
            + 2 * (dff_pad + dm_pad) * 4           # biases (f32)
            + tm * dff_pad * 4                     # h intermediate (f32)
            + tm * dm_pad * 4)                     # y intermediate (f32)


def _est_tiled(tm, tff, dm_pad, in_b, out_b):
    return (2 * tm * dm_pad * in_b
            + 2 * tm * dm_pad * out_b
            + 4 * dm_pad * tff * in_b              # W1 slab + W2 slab, double-buffered
            + 2 * (tff + dm_pad) * 4
            + tm * dm_pad * 4                      # f32 accumulator scratch
            + tm * tff * 4)                        # h intermediate (f32)


# ---------------------------------------------------------------------------
# Wrapper
# ---------------------------------------------------------------------------
def prepare_params(w1, b1, w2, b2, *, compute_dtype=jnp.bfloat16):
    """Pad/cast parameters once outside the hot path (hoists the per-call
    pad + astype).  The returned params make the in-call pad/cast a no-op."""
    d_model, d_ff = w1.shape
    dm_pad, dff_pad = _round_up(d_model, 128), _round_up(d_ff, 128)
    cdt = jnp.dtype(compute_dtype)
    w1p = jnp.pad(w1.astype(cdt), ((0, dm_pad - d_model), (0, dff_pad - d_ff)))
    w2p = jnp.pad(w2.astype(cdt), ((0, dff_pad - d_ff), (0, dm_pad - d_model)))
    b1p = jnp.pad(b1.astype(jnp.float32), (0, dff_pad - d_ff))
    b2p = jnp.pad(b2.astype(jnp.float32), (0, dm_pad - d_model))
    return w1p, b1p, w2p, b2p


@functools.partial(jax.jit, static_argnames=("tm", "tff", "compute_dtype"))
def position_wise_feed_forward(x, w1, b1, w2, b2, *, tm=None, tff=None,
                               compute_dtype=None):
    """x: (batch, seq, d_model) -> (batch, seq, d_model).

    compute_dtype: matmul operand dtype; defaults to bfloat16 for f32 inputs
                   (f32 accumulation always).  Pass jnp.float32 for exactness.
    tff: if given, forces the d_ff-tiled path with that tile; if None, a
         weights-resident path is used whenever it fits the VMEM budget.
    """
    batch, seq, d_model = x.shape
    out_dtype = x.dtype
    if compute_dtype is None:
        cdt = jnp.dtype(jnp.bfloat16) if x.dtype == jnp.float32 else jnp.dtype(x.dtype)
    else:
        cdt = jnp.dtype(compute_dtype)
    in_b = cdt.itemsize
    out_b = jnp.dtype(out_dtype).itemsize

    d_ff = w1.shape[1]
    M = batch * seq
    dm_pad = _round_up(d_model, 128)
    dff_pad = _round_up(d_ff, 128)
    budget, cap = _vmem_budget_and_cap()

    tm_pick = _pick_row_tile(M, tm)

    # ---- path choice: weights-resident (preferred) vs d_ff-tiled -----------
    resident = False
    if tff is None:
        candidates = [tm_pick] if (tm is not None or tm_pick <= 256) else [tm_pick, 256]
        for t in candidates:
            if _est_resident(t, dm_pad, dff_pad, in_b, out_b) <= budget:
                resident, tm_pick = True, t
                break

    if resident:
        tff_pick = dff_pad
        est = _est_resident(tm_pick, dm_pad, dff_pad, in_b, out_b)
    else:
        tff_pick = min(dff_pad, 512) if tff is None else \
            max(128, min(dff_pad, _round_up(tff, 128)))
        tm_floor = min(tm_pick, 256)
        # Prefer shrinking tff; never drop tm below 256 (or the whole M tile).
        while _est_tiled(tm_pick, tff_pick, dm_pad, in_b, out_b) > budget and tff_pick > 128:
            tff_pick = max(128, tff_pick // 2)
        while _est_tiled(tm_pick, tff_pick, dm_pad, in_b, out_b) > budget and tm_pick > tm_floor:
            tm_pick = max(tm_floor, _round_up(tm_pick // 2, 8))
        dff_pad = _round_up(dff_pad, tff_pick)       # make tff divide dff_pad
        est = _est_tiled(tm_pick, tff_pick, dm_pad, in_b, out_b)

    M_pad = _round_up(M, tm_pick)
    grid_m = M_pad // tm_pick

    # ---- padding / casting (skipped when already aligned & in compute dtype)
    def pad2(a, rows, cols, dt):
        if a.dtype != dt:
            a = a.astype(dt)
        pr, pc = rows - a.shape[0], cols - a.shape[1]
        return a if (pr == 0 and pc == 0) else jnp.pad(a, ((0, pr), (0, pc)))

    def pad1(a, n):
        a = a.astype(jnp.float32)
        p = n - a.shape[0]
        a = a if p == 0 else jnp.pad(a, (0, p))
        return a.reshape(1, n)

    x2d = pad2(x.reshape(M, d_model), M_pad, dm_pad, cdt)
    w1p = pad2(w1, dm_pad, dff_pad, cdt)
    w2p = pad2(w2, dff_pad, dm_pad, cdt)
    b1p = pad1(b1, dff_pad)
    b2p = pad1(b2, dm_pad)

    cost = pl.CostEstimate(
        flops=4 * M_pad * dm_pad * dff_pad,
        transcendentals=0,
        bytes_accessed=int(
            M_pad * dm_pad * (in_b + out_b)
            + (1 if resident else grid_m) * (w1p.size + w2p.size) * in_b
            + (b1p.size + b2p.size) * 4),
    )
    vmem_limit = int(min(max(int(1.3 * est) + (4 << 20), 32 << 20), cap))
    out_shape = jax.ShapeDtypeStruct((M_pad, dm_pad), out_dtype)

    if resident:
        out2d = pl.pallas_call(
            _ffn_kernel_resident,
            out_shape=out_shape,
            grid_spec=pltpu.PrefetchScalarGridSpec(
                num_scalar_prefetch=0,
                grid=(grid_m,),
                in_specs=[
                    pl.BlockSpec((tm_pick, dm_pad), lambda i: (i, 0)),    # x tile
                    pl.BlockSpec((dm_pad, dff_pad), lambda i: (0, 0)),    # W1 (resident)
                    pl.BlockSpec((1, dff_pad), lambda i: (0, 0)),         # b1
                    pl.BlockSpec((dff_pad, dm_pad), lambda i: (0, 0)),    # W2 (resident)
                    pl.BlockSpec((1, dm_pad), lambda i: (0, 0)),          # b2
                ],
                out_specs=pl.BlockSpec((tm_pick, dm_pad), lambda i: (i, 0)),
            ),
            compiler_params=pltpu.CompilerParams(
                dimension_semantics=("parallel",),
                vmem_limit_bytes=vmem_limit),
            cost_estimate=cost,
        )(x2d, w1p, b1p, w2p, b2p)
    else:
        grid = (grid_m, dff_pad // tff_pick)
        out2d = pl.pallas_call(
            _ffn_kernel_tiled,
            out_shape=out_shape,
            grid_spec=pltpu.PrefetchScalarGridSpec(
                num_scalar_prefetch=0,
                grid=grid,
                in_specs=[
                    pl.BlockSpec((tm_pick, dm_pad), lambda i, k: (i, 0)),   # x tile
                    pl.BlockSpec((dm_pad, tff_pick), lambda i, k: (0, k)),  # W1 slab
                    pl.BlockSpec((1, tff_pick), lambda i, k: (0, k)),       # b1 slab
                    pl.BlockSpec((tff_pick, dm_pad), lambda i, k: (k, 0)),  # W2 slab
                    pl.BlockSpec((1, dm_pad), lambda i, k: (0, 0)),         # b2
                ],
                out_specs=pl.BlockSpec((tm_pick, dm_pad), lambda i, k: (i, 0)),
                scratch_shapes=[pltpu.VMEM((tm_pick, dm_pad), jnp.float32)],
            ),
            compiler_params=pltpu.CompilerParams(
                dimension_semantics=("parallel", "arbitrary"),
                vmem_limit_bytes=vmem_limit),
            cost_estimate=cost,
        )(x2d, w1p, b1p, w2p, b2p)

    return out2d[:M, :d_model].reshape(batch, seq, d_model)


# ---------------------------------------------------------------------------
# Demo / self-test
# ---------------------------------------------------------------------------
def init_params(key, d_model, d_ff, dtype=jnp.float32):
    """Deterministic init mimicking nn.Linear's U(-1/sqrt(fan_in), 1/sqrt(fan_in))."""
    k1, k2, k3, k4 = jax.random.split(key, 4)
    bound1 = 1.0 / (d_model ** 0.5)
    bound2 = 1.0 / (d_ff ** 0.5)
    w1 = jax.random.uniform(k1, (d_model, d_ff), dtype, -bound1, bound1)
    b1 = jax.random.uniform(k2, (d_ff,), dtype, -bound1, bound1)
    w2 = jax.random.uniform(k3, (d_ff, d_model), dtype, -bound2, bound2)
    b2 = jax.random.uniform(k4, (d_model,), dtype, -bound2, bound2)
    return w1, b1, w2, b2


def _ref_ffn(x, w1, b1, w2, b2):
    return jnp.maximum(x @ w1 + b1, 0.0) @ w2 + b2


if __name__ == "__main__":
    key = jax.random.PRNGKey(0)
    kx, kp, kx2, kp2, kx3, kp3 = jax.random.split(key, 6)

    # 1) Small shapes, default (bf16-compute, weights-resident) path.
    batch, seq, d_model, d_ff = 2, 8, 32, 64
    x = jax.random.normal(kx, (batch, seq, d_model), dtype=jnp.float32)
    w1, b1, w2, b2 = init_params(kp, d_model, d_ff)
    out = jax.block_until_ready(position_wise_feed_forward(x, w1, b1, w2, b2))
    ref = _ref_ffn(x, w1, b1, w2, b2)
    assert out.shape == (batch, seq, d_model)
    assert jnp.allclose(out, ref, atol=3e-2, rtol=3e-2)        # bf16 operands

    # 2) Same inputs, exact f32 compute.
    out_f32 = jax.block_until_ready(
        position_wise_feed_forward(x, w1, b1, w2, b2, compute_dtype=jnp.float32))
    assert jnp.allclose(out_f32, ref, atol=1e-5, rtol=1e-5)

    # 3) Forced d_ff-tiled path (exercises the k-axis accumulator), f32.
    b2_, s2, dm2, dff2 = 2, 24, 64, 384
    x2 = jax.random.normal(kx2, (b2_, s2, dm2), dtype=jnp.float32)
    w1b, b1b, w2b, b2b = init_params(kp2, dm2, dff2)
    out2 = jax.block_until_ready(
        position_wise_feed_forward(x2, w1b, b1b, w2b, b2b,
                                   tm=16, tff=128, compute_dtype=jnp.float32))
    ref2 = _ref_ffn(x2, w1b, b1b, w2b, b2b)
    assert out2.shape == (b2_, s2, dm2)
    assert jnp.allclose(out2, ref2, atol=1e-4, rtol=1e-4)

    # 4) Moderate M: auto row-tiling (grid_m >= 2), resident weights, bf16,
    #    with pre-padded/pre-cast params (hoisted conversion).
    b3_, s3, dm3, dff3 = 4, 128, 128, 256
    x3 = jax.random.normal(kx3, (b3_, s3, dm3), dtype=jnp.float32)
    w1c, b1c, w2c, b2c = init_params(kp3, dm3, dff3)
    w1cp, b1cp, w2cp, b2cp = prepare_params(w1c, b1c, w2c, b2c)
    out3 = jax.block_until_ready(
        position_wise_feed_forward(x3, w1cp, b1cp, w2cp, b2cp))
    ref3 = _ref_ffn(x3, w1c, b1c, w2c, b2c)
    assert out3.shape == (b3_, s3, dm3)
    assert jnp.allclose(out3, ref3, atol=3e-2, rtol=3e-2)      # bf16 operands

    print("KERNEL_OK")
</pallas_src>

<mosaic_0001>
module attributes {stable_mosaic.version = 11 : i64} {
  func.func @_ffn_kernel_resident(%arg0: i32, %arg1: memref<16x128xbf16, #tpu.memory_space<vmem>>, %arg2: memref<128x128xbf16, #tpu.memory_space<vmem>>, %arg3: memref<1x128xf32, #tpu.memory_space<vmem>>, %arg4: memref<128x128xbf16, #tpu.memory_space<vmem>>, %arg5: memref<1x128xf32, #tpu.memory_space<vmem>>, %arg6: memref<16x128xf32, #tpu.memory_space<vmem>>) attributes {dimension_semantics = [#tpu.dimension_semantics<parallel>], iteration_bounds = array<i64: 1>, scalar_prefetch = 0 : i64, scratch_operands = 0 : i64, tpu.core_type = #tpu.core_type<tc>, window_params = [{transform_indices = @transform_0, window_bounds = array<i64: 16, 128>}, {pipeline_mode = #tpu.pipeline_mode<synchronous>, transform_indices = @transform_1, window_bounds = array<i64: 128, 128>}, {pipeline_mode = #tpu.pipeline_mode<synchronous>, transform_indices = @transform_2, window_bounds = array<i64: 1, 128>}, {pipeline_mode = #tpu.pipeline_mode<synchronous>, transform_indices = @transform_3, window_bounds = array<i64: 128, 128>}, {pipeline_mode = #tpu.pipeline_mode<synchronous>, transform_indices = @transform_4, window_bounds = array<i64: 1, 128>}, {transform_indices = @transform_5, window_bounds = array<i64: 16, 128>}]} {
    %c0 = arith.constant 0 : index
    %c0_0 = arith.constant 0 : index
    %0 = vector.load %arg1[%c0, %c0_0] : memref<16x128xbf16, #tpu.memory_space<vmem>>, vector<16x128xbf16>
    %c0_1 = arith.constant 0 : index
    %c0_2 = arith.constant 0 : index
    %1 = vector.load %arg2[%c0_1, %c0_2] : memref<128x128xbf16, #tpu.memory_space<vmem>>, vector<128x128xbf16>
    %cst = arith.constant dense<0.000000e+00> : vector<16x128xf32>
    %2 = tpu.matmul %0, %1, %cst {dimension_numbers = #tpu.dot_dimension_numbers<[1], [0], [0], [1], [0, 0, 1, 1], [], []>} : vector<16x128xbf16>, vector<128x128xbf16>, vector<16x128xf32> -> vector<16x128xf32>
    %c0_3 = arith.constant 0 : index
    %c0_4 = arith.constant 0 : index
    %3 = vector.load %arg3[%c0_3, %c0_4] : memref<1x128xf32, #tpu.memory_space<vmem>>, vector<1x128xf32>
    %4 = vector.broadcast %3 : vector<1x128xf32> to vector<16x128xf32>
    %5 = arith.addf %2, %4 : vector<16x128xf32>
    %cst_5 = arith.constant 0.000000e+00 : f32
    %6 = vector.broadcast %cst_5 : f32 to vector<16x128xf32>
    %7 = arith.maximumf %5, %6 : vector<16x128xf32>
    %8 = arith.truncf %7 : vector<16x128xf32> to vector<16x128xbf16>
    %c0_6 = arith.constant 0 : index
    %c0_7 = arith.constant 0 : index
    %9 = vector.load %arg4[%c0_6, %c0_7] : memref<128x128xbf16, #tpu.memory_space<vmem>>, vector<128x128xbf16>
    %cst_8 = arith.constant dense<0.000000e+00> : vector<16x128xf32>
    %10 = tpu.matmul %8, %9, %cst_8 {dimension_numbers = #tpu.dot_dimension_numbers<[1], [0], [0], [1], [0, 0, 1, 1], [], []>} : vector<16x128xbf16>, vector<128x128xbf16>, vector<16x128xf32> -> vector<16x128xf32>
    %c0_9 = arith.constant 0 : index
    %c0_10 = arith.constant 0 : index
    %11 = vector.load %arg5[%c0_9, %c0_10] : memref<1x128xf32, #tpu.memory_space<vmem>>, vector<1x128xf32>
    %12 = vector.broadcast %11 : vector<1x128xf32> to vector<16x128xf32>
    %13 = arith.addf %10, %12 : vector<16x128xf32>
    %c0_11 = arith.constant 0 : index
    %c0_12 = arith.constant 0 : index
    %14 = vector.load %arg6[%c0_11, %c0_12] : memref<16x128xf32, #tpu.memory_space<vmem>>, vector<16x128xf32>
    tpu.vector_store %arg6[%c0_11, %c0_12], %13 {strides = array<i32>} : memref<16x128xf32, #tpu.memory_space<vmem>>, vector<16x128xf32>,
    return
  }
  func.func @transform_0(%arg0: i32) -> (i32, i32) {
    %c0_i32 = arith.constant 0 : i32
    %c0_i32_0 = arith.constant 0 : i32
    return %arg0, %c0_i32 : i32, i32
  }
  func.func @transform_1(%arg0: i32) -> (i32, i32) {
    %c0_i32 = arith.constant 0 : i32
    %c0_i32_0 = arith.constant 0 : i32
    %c0_i32_1 = arith.constant 0 : i32
    return %c0_i32, %c0_i32_0 : i32, i32
  }
  func.func @transform_2(%arg0: i32) -> (i32, i32) {
    %c0_i32 = arith.constant 0 : i32
    %c0_i32_0 = arith.constant 0 : i32
    %c0_i32_1 = arith.constant 0 : i32
    return %c0_i32, %c0_i32_0 : i32, i32
  }
  func.func @transform_3(%arg0: i32) -> (i32, i32) {
    %c0_i32 = arith.constant 0 : i32
    %c0_i32_0 = arith.constant 0 : i32
    %c0_i32_1 = arith.constant 0 : i32
    return %c0_i32, %c0_i32_0 : i32, i32
  }
  func.func @transform_4(%arg0: i32) -> (i32, i32) {
    %c0_i32 = arith.constant 0 : i32
    %c0_i32_0 = arith.constant 0 : i32
    %c0_i32_1 = arith.constant 0 : i32
    return %c0_i32, %c0_i32_0 : i32, i32
  }
  func.func @transform_5(%arg0: i32) -> (i32, i32) {
    %c0_i32 = arith.constant 0 : i32
    %c0_i32_0 = arith.constant 0 : i32
    return %arg0, %c0_i32 : i32, i32
  }
}

</mosaic_0001>

<bundles_post_ra>
// kernel: position_wise_feed_forward.1
= control target key start
LH: loop header
LB: loop body
LE: loop exit
PB: predicated region body
PF: predicated region fallthrough
CT: control target
= control target key end

     0   :  { %v358_v0 = vmov 0.0   ;;  %vm359_vm0 = vmmov 0   ;;  %s453_s1 = inlined_call_operand.vmem [shape: bf16[128,128], index: 1, kind: input, shape index: {}]   ;;  %s454_s3 = inlined_call_operand.vmem [shape: bf16[128,128], index: 3, kind: input, shape index: {}]   ;;  %s455_s0 = inlined_call_operand.vmem [shape: bf16[16,128], index: 0, kind: input, shape index: {}]   ;;  %s456_s2 = inlined_call_operand.vmem [shape: f32[1,128], index: 2, kind: input, shape index: {}]   ;;  %s457_s4 = inlined_call_operand.vmem [shape: f32[1,128], index: 4, kind: input, shape index: {}]   ;;  %s458_s5 = inlined_call_operand.vmem [shape: f32[16,128], index: 5, kind: output, shape index: {}]  }
   0x1   :  { %299 = vmatprep.subr.bf16.mxu0 %v358_v0  ;;  %v341_v1 = vld [vmem:[%s453_s1] sm:$0xff]   ;;  %315 = vmatprep.mubr.msk.bf16.mxu0 %vm359_vm0, %v358_v0  ;;  %v342_v2 = vld [vmem:[%s453_s1 + $0x8] sm:$0xff]   ;;  %v343_v3 = vld [vmem:[%s453_s1 + $0x10] sm:$0xff]  }
   0x2   :  { %319 = vmatprep.subr.bf16.mxu1 %v358_v0  ;;  %335 = vmatprep.mubr.msk.bf16.mxu1 %vm359_vm0, %v358_v0  ;;  %v350_v4 = vld [vmem:[%s454_s3] sm:$0xff]   ;;  %v344_v5 = vld [vmem:[%s453_s1 + $0x18] sm:$0xff]   ;;  %v351_v6 = vld [vmem:[%s454_s3 + $0x8] sm:$0xff]  }
   0x3   :  { %300 = vmatpush3.bf16.msra.mxu0 %v341_v1  ;;  %320 = vmatpush3.bf16.msra.mxu1 %v350_v4  ;;  %v345_v7 = vld [vmem:[%s453_s1 + $0x20] sm:$0xff]   ;;  %v352_v8 = vld [vmem:[%s454_s3 + $0x10] sm:$0xff]   ;;  %v346_v9 = vld [vmem:[%s453_s1 + $0x28] sm:$0xff]  }
   0x4   :  { %301 = vmatprep.subr.bf16.mxu0 %v358_v0  ;;  %321 = vmatprep.subr.bf16.mxu1 %v358_v0  ;;  %v353_v10 = vld [vmem:[%s454_s3 + $0x18] sm:$0xff]   ;;  %v347_v11 = vld [vmem:[%s453_s1 + $0x30] sm:$0xff]   ;;  %v354_v12 = vld [vmem:[%s454_s3 + $0x20] sm:$0xff]  }
   0x5   :  { %v348_v13 = vld [vmem:[%s453_s1 + $0x38] sm:$0xff]   ;;  %v355_v14 = vld [vmem:[%s454_s3 + $0x28] sm:$0xff]   ;;  %v349_v15 = vld [vmem:[%s455_s0] sm:$0xff]  }
   0x6   :  { %v356_v16 = vld [vmem:[%s454_s3 + $0x30] sm:$0xff]   ;;  %v357_v17 = vld [vmem:[%s454_s3 + $0x38] sm:$0xff]   ;;  %v262_v18 = vld [vmem:[%s456_s2] ss:$0 sm:$0xff] }
   0x7   :  { %302 = vmatpush3.bf16.msra.mxu0 %v342_v2  ;;  %322 = vmatpush3.bf16.msra.mxu1 %v351_v6  ;;  %v272_v28 = vld [vmem:[%s457_s4] ss:$0 sm:$0xff] }
   0x8   :  { %303 = vmatprep.subr.bf16.mxu0 %v358_v0  ;;  %323 = vmatprep.subr.bf16.mxu1 %v358_v0 }
   0xb   :  { %304 = vmatpush3.bf16.msra.mxu0 %v343_v3  ;;  %324 = vmatpush3.bf16.msra.mxu1 %v352_v8 }
   0xc   :  { %305 = vmatprep.subr.bf16.mxu0 %v358_v0  ;;  %325 = vmatprep.subr.bf16.mxu1 %v358_v0 }
   0xf   :  { %306 = vmatpush3.bf16.msra.mxu0 %v344_v5  ;;  %326 = vmatpush3.bf16.msra.mxu1 %v353_v10 }
  0x10   :  { %307 = vmatprep.subr.bf16.mxu0 %v358_v0  ;;  %327 = vmatprep.subr.bf16.mxu1 %v358_v0 }
  0x13   :  { %308 = vmatpush3.bf16.msra.mxu0 %v345_v7  ;;  %328 = vmatpush3.bf16.msra.mxu1 %v354_v12 }
  0x14   :  { %309 = vmatprep.subr.bf16.mxu0 %v358_v0  ;;  %329 = vmatprep.subr.bf16.mxu1 %v358_v0 }
  0x17   :  { %310 = vmatpush3.bf16.msra.mxu0 %v346_v9  ;;  %330 = vmatpush3.bf16.msra.mxu1 %v355_v14 }
  0x18   :  { %311 = vmatprep.subr.bf16.mxu0 %v358_v0  ;;  %331 = vmatprep.subr.bf16.mxu1 %v358_v0 }
  0x1b   :  { %312 = vmatpush3.bf16.msra.mxu0 %v347_v11  ;;  %332 = vmatpush3.bf16.msra.mxu1 %v356_v16 }
  0x1c   :  { %313 = vmatprep.subr.bf16.mxu0 %v358_v0  ;;  %333 = vmatprep.subr.bf16.mxu1 %v358_v0 }
  0x1f   :  { %314 = vmatpush3.bf16.msra.mxu0 %v348_v13  ;;  %334 = vmatpush3.bf16.msra.mxu1 %v357_v17 }
  0x22   :  { %316 = vmatmul.mubr.bf16.vlgmr.msra.gmra.mrb[0].mxu0 %v349_v15 }
  0xf5   :  { %v134_v19 = vpop.f32.mrb[0].mxu0 }
  0xf6   :  { %v135_v20 = vadd.f32 %v262_v18, %v134_v19  ;;  %v317_v21 = vpop.f32.mrb[1].mxu0 }
  0xf7   :  { %v137_v22 = vpop.f32.mrb[2].mxu0 }
  0xf8   :  { %v138_v23 = vadd.f32 %v262_v18, %v137_v22  ;;  %v318_v24 = vpop.f32.mrb[3].mxu0  ;;  %v141_v25 = vmax.f32 %v135_v20, 0.0 }
  0xfa   :  { %v142_v26 = vmax.f32 %v138_v23, 0.0 }
  0xfc   :  { %v143_v27 = vpack.c.bf16 %v142_v26, %v141_v25 }
  0xfe   :  { %336 = vmatmul.mubr.bf16.vlgmr.msra.gmra.mrb[0].mxu1 %v143_v27 }
 0x1d1   :  { %v249_v29 = vpop.f32.mrb[0].mxu1 }
 0x1d2   :  { %v250_v30 = vadd.f32 %v272_v28, %v249_v29  ;;  %v337_v31 = vpop.f32.mrb[1].mxu1 }
 0x1d3   :  { %v252_v32 = vpop.f32.mrb[2].mxu1 }
 0x1d4   :  { %256 = vst [vmem:[%s458_s5] sm:$0xff] %v250_v30  ;;  %v253_v33 = vadd.f32 %v272_v28, %v252_v32  ;;  %v338_v34 = vpop.f32.mrb[3].mxu1 }
 0x1d6   :  { %257 = vst [vmem:[%s458_s5 + $0x8] sm:$0xff] %v253_v33 }

</bundles_post_ra>
